<compile_context>
chip_gen: v7x
topology: tpu7x:2x2x1
jax: 0.10.0
libtpu: 0.0.40
codegen_flags: <defaults>
</compile_context>

<pallas_src>
import jax
import jax.numpy as jnp
from jax.experimental import pallas as pl
from jax.experimental.pallas import tpu as pltpu


def _linear_hardswish_kernel(x_ref, wt_ref, b_ref, o_ref):
    # x_ref: (TM, K)   wt_ref: (K, N)   b_ref: (1, N)   o_ref: (TM, N)
    y = jnp.dot(x_ref[...], wt_ref[...], preferred_element_type=jnp.float32)
    y = y + b_ref[...]
    gate = jnp.clip(y + 3.0, 0.0, 6.0)
    o_ref[...] = (y * gate * (1.0 / 6.0)).astype(o_ref.dtype)


def _round_up(a, b):
    return ((a + b - 1) // b) * b


def linear_hardswish(x, w, b, *, tm_max=4096):
    """x: (..., K) float32; w: (N, K) (PyTorch nn.Linear layout); b: (N,)."""
    *lead, K = x.shape
    N = w.shape[0]
    M = 1
    for d in lead:
        M *= d

    x2 = x.reshape(M, K)
    w_t = jnp.transpose(w)      # (K, N): one-time 128 KiB, MXU-preferred layout
    b2 = b.reshape(1, N)

    # Row-tile selection:
    #  * small M: split into >=2 grid steps when possible (megacore on v7x,
    #    DMA/compute overlap), sublane-aligned (multiple of 8).
    #  * large M: target ~6 grid steps, clamped to [512, tm_max].
    if M <= 1024:
        TM = max(8, _round_up(pl.cdiv(M, 2), 8))
    else:
        TM = max(512, _round_up(pl.cdiv(M, 6), 8))
    TM = min(TM, tm_max)
    grid = (pl.cdiv(M, TM),)    # partial last block handled by Pallas masking

    # Double-buffered x/out tiles + resident weight/bias, plus headroom.
    vmem_bytes = 2 * TM * (K + N) * 4 + (K * N + N) * 4
    vmem_limit = min(max(vmem_bytes + (8 << 20), 32 << 20), 64 << 20)

    cost = pl.CostEstimate(
        flops=2 * M * K * N,
        transcendentals=0,
        bytes_accessed=4 * (M * K + K * N + N + M * N),
    )

    out = pl.pallas_call(
        _linear_hardswish_kernel,
        out_shape=jax.ShapeDtypeStruct((M, N), jnp.float32),
        grid=grid,
        in_specs=[
            pl.BlockSpec((TM, K), lambda i: (i, 0)),   # x tile, pipelined over M
            pl.BlockSpec((K, N), lambda i: (0, 0)),    # weight (K,N), VMEM-resident
            pl.BlockSpec((1, N), lambda i: (0, 0)),    # bias, VMEM-resident
        ],
        out_specs=pl.BlockSpec((TM, N), lambda i: (i, 0)),
        compiler_params=pltpu.CompilerParams(
            dimension_semantics=("parallel",),         # megacore split on v7x
            vmem_limit_bytes=vmem_limit,
        ),
        cost_estimate=cost,
    )(x2, w_t, b2)

    return out.reshape(*lead, N)


def _reference(x, w, b):
    y = x @ w.T + b
    return y * jnp.clip(y + 3.0, 0.0, 6.0) / 6.0


if __name__ == "__main__":
    key = jax.random.PRNGKey(0)
    kx, kw, kb, kx2, kx3 = jax.random.split(key, 5)

    in_f, out_f = 128, 256

    # Deterministic params (mimic nn.Linear uniform(-1/sqrt(K), 1/sqrt(K))).
    bound = 1.0 / jnp.sqrt(jnp.float32(in_f))
    w = jax.random.uniform(kw, (out_f, in_f), minval=-bound, maxval=bound,
                           dtype=jnp.float32)
    b = jax.random.uniform(kb, (out_f,), minval=-bound, maxval=bound,
                           dtype=jnp.float32)

    # Small demo shape (feature axis last, as nn.Linear requires).
    batch, seq = 2, 8
    x = jax.random.normal(kx, (batch, seq, in_f), dtype=jnp.float32)
    out = linear_hardswish(x, w, b)
    jax.block_until_ready(out)
    ref = _reference(x, w, b)
    assert out.shape == (batch, seq, out_f)
    assert jnp.allclose(out, ref, atol=1e-5, rtol=1e-5)

    # Ragged M (mirrors the original tensor's 23): partial last block path.
    x_rag = jax.random.normal(kx2, (1, 23, in_f), dtype=jnp.float32)
    out_rag = linear_hardswish(x_rag, w, b)
    jax.block_until_ready(out_rag)
    assert out_rag.shape == (1, 23, out_f)
    assert jnp.allclose(out_rag, _reference(x_rag, w, b), atol=1e-5, rtol=1e-5)

    # Multi-tile grid with a masked partial last block (M=1200, TM=512, grid=3).
    x_big = jax.random.normal(kx3, (4, 300, in_f), dtype=jnp.float32)
    out_big = linear_hardswish(x_big, w, b)
    jax.block_until_ready(out_big)
    assert out_big.shape == (4, 300, out_f)
    assert jnp.allclose(out_big, _reference(x_big, w, b), atol=1e-5, rtol=1e-5)

    print("KERNEL_OK")
</pallas_src>

<mosaic_0001>
module attributes {stable_mosaic.version = 11 : i64} {
  func.func @_linear_hardswish_kernel(%arg0: i32, %arg1: memref<8x128xf32, #tpu.memory_space<vmem>>, %arg2: memref<128x256xf32, #tpu.memory_space<vmem>>, %arg3: memref<1x256xf32, #tpu.memory_space<vmem>>, %arg4: memref<8x256xf32, #tpu.memory_space<vmem>>) attributes {dimension_semantics = [#tpu.dimension_semantics<parallel>], iteration_bounds = array<i64: 2>, scalar_prefetch = 0 : i64, scratch_operands = 0 : i64, tpu.core_type = #tpu.core_type<tc>, window_params = [{transform_indices = @transform_0, window_bounds = array<i64: 8, 128>}, {pipeline_mode = #tpu.pipeline_mode<synchronous>, transform_indices = @transform_1, window_bounds = array<i64: 128, 256>}, {pipeline_mode = #tpu.pipeline_mode<synchronous>, transform_indices = @transform_2, window_bounds = array<i64: 1, 256>}, {transform_indices = @transform_3, window_bounds = array<i64: 8, 256>}]} {
    %c0 = arith.constant 0 : index
    %c0_0 = arith.constant 0 : index
    %0 = vector.load %arg1[%c0, %c0_0] : memref<8x128xf32, #tpu.memory_space<vmem>>, vector<8x128xf32>
    %c0_1 = arith.constant 0 : index
    %c0_2 = arith.constant 0 : index
    %1 = vector.load %arg2[%c0_1, %c0_2] : memref<128x256xf32, #tpu.memory_space<vmem>>, vector<128x256xf32>
    %cst = arith.constant dense<0.000000e+00> : vector<8x256xf32>
    %2 = tpu.matmul %0, %1, %cst {dimension_numbers = #tpu.dot_dimension_numbers<[1], [0], [0], [1], [0, 0, 1, 1], [], []>} : vector<8x128xf32>, vector<128x256xf32>, vector<8x256xf32> -> vector<8x256xf32>
    %c0_3 = arith.constant 0 : index
    %c0_4 = arith.constant 0 : index
    %3 = vector.load %arg3[%c0_3, %c0_4] : memref<1x256xf32, #tpu.memory_space<vmem>>, vector<1x256xf32>
    %4 = vector.broadcast %3 : vector<1x256xf32> to vector<8x256xf32>
    %5 = arith.addf %2, %4 : vector<8x256xf32>
    %cst_5 = arith.constant 3.000000e+00 : f32
    %6 = vector.broadcast %cst_5 : f32 to vector<8x256xf32>
    %7 = arith.addf %5, %6 : vector<8x256xf32>
    %cst_6 = arith.constant 0.000000e+00 : f32
    %cst_7 = arith.constant 6.000000e+00 : f32
    %8 = vector.broadcast %cst_6 : f32 to vector<8x256xf32>
    %9 = arith.maximumf %8, %7 : vector<8x256xf32>
    %10 = vector.broadcast %cst_7 : f32 to vector<8x256xf32>
    %11 = arith.minimumf %10, %9 : vector<8x256xf32>
    %12 = arith.mulf %5, %11 : vector<8x256xf32>
    %cst_8 = arith.constant 0.166666672 : f32
    %13 = vector.broadcast %cst_8 : f32 to vector<8x256xf32>
    %14 = arith.mulf %12, %13 : vector<8x256xf32>
    %c0_9 = arith.constant 0 : index
    %c0_10 = arith.constant 0 : index
    %15 = vector.load %arg4[%c0_9, %c0_10] : memref<8x256xf32, #tpu.memory_space<vmem>>, vector<8x256xf32>
    tpu.vector_store %arg4[%c0_9, %c0_10], %14 {strides = array<i32>} : memref<8x256xf32, #tpu.memory_space<vmem>>, vector<8x256xf32>,
    return
  }
  func.func @transform_0(%arg0: i32) -> (i32, i32) {
    %c0_i32 = arith.constant 0 : i32
    %c0_i32_0 = arith.constant 0 : i32
    return %arg0, %c0_i32 : i32, i32
  }
  func.func @transform_1(%arg0: i32) -> (i32, i32) {
    %c0_i32 = arith.constant 0 : i32
    %c0_i32_0 = arith.constant 0 : i32
    %c0_i32_1 = arith.constant 0 : i32
    return %c0_i32, %c0_i32_0 : i32, i32
  }
  func.func @transform_2(%arg0: i32) -> (i32, i32) {
    %c0_i32 = arith.constant 0 : i32
    %c0_i32_0 = arith.constant 0 : i32
    %c0_i32_1 = arith.constant 0 : i32
    return %c0_i32, %c0_i32_0 : i32, i32
  }
  func.func @transform_3(%arg0: i32) -> (i32, i32) {
    %c0_i32 = arith.constant 0 : i32
    %c0_i32_0 = arith.constant 0 : i32
    return %arg0, %c0_i32 : i32, i32
  }
}

</mosaic_0001>

<bundles_post_ra>
// kernel: tpu_custom_call.1
= control target key start
LH: loop header
LB: loop body
LE: loop exit
PB: predicated region body
PF: predicated region fallthrough
CT: control target
= control target key end

     0   :  { %8 = vsyncpa [#allocation3], 0  ;;  %s891_s0 = inlined_call_operand.hbm [shape: f32[16,128], index: 0, kind: input, shape index: {}]   ;;  %s892_s1 = inlined_call_operand.hbm [shape: f32[128,256], index: 1, kind: input, shape index: {}]   ;;  %s893_s2 = inlined_call_operand.vmem [shape: f32[1,256], index: 2, kind: input, shape index: {}]   ;;  %s894_s3 = inlined_call_operand.hbm [shape: f32[16,256], index: 3, kind: output, shape index: {}]  }
   0x1   :  { %10 = vsyncpa [#allocation3 + $0x1], 0 }
   0x2   :  { %11 = vsyncpa [#allocation6], 0 }
   0x3   :  { %12 = vsyncpa [#allocation4], 0 }
   0x4   :  { %14 = vsyncpa [#allocation4 + $0x1], 0  ;;  %s688_s12 = smov 0   ;;  %s690_s13 = smov 0  }
   0x5   :  { %s692_s14 = smov 0   ;;  %s694_s15 = smov 0  }
   0x6 LB: > { %s709_s16 = sadd.s32 4294967295, %s660_s15   ;;  %s424_s17 = sadd.s32 4294967294, %s660_s15   ;;  %s660_s15 = sphi %s694_s15, %s914_s15   ;;  %s656_s14 = sphi %s692_s14, %s913_s14   ;;  %s652_s13 = sphi %s690_s13, %s912_s13   ;;  %s648_s12 = sphi %s688_s12, %s911_s12  }
   0x7   : > { %p40_p0 = scmp.ne.s32.totalorder %s652_s13, %s648_s12  ;;  %p895_p1 = scmp.eq.s32.totalorder %s709_s16, 0 }
   0x8   : > { %p112_p3 = scmp.eq.s32.totalorder %s424_s17, 1  ;;  %p425_p5 = scmp.ge.s32.totalorder %s660_s15, 1 }
   0x9   : > { %p718_p4 = por %p895_p1, %p40_p0  ;;  %p119_p7 = scmp.lt.s32.totalorder %s660_s15, 3 }
   0xa   : > { %p723_p6 = por %p112_p3, %p40_p0  ;;  %s662_s21 = smov [#allocation5]  }
   0xb   : > { %s898_s18 = scalar_select %p718_p4, 1, 0 }
   0xc   : > { %s899_s19 = scalar_select %p723_p6, 1, 0 }
   0xd   : > { %p728_p8 = pnand %p425_p5, %p119_p7  ;;  %s131_s22 = sshll.u32 %s662_s21, 4  ;;  %s732_s22 = int_to_ptr.vmem [resolvable:$true] %s131_s22 }
   0xe   : > { %s744_s24 = sadd.s32 1, %s660_s15   ;;  %s27_s25 = sadd.s32 1, %s656_s14 }
   0xf   : > { %s900_s20 = scalar_select %p728_p8, 1, 0 }
  0x10   : > { %p480_p9 = pneg %p728_p8  ;;  %s24_s26 = ssub.s32 %s660_s15, %s744_s24 }
  0x11   : > { %s532_s29 = scalar_lea.hbm %s892_s1, 4096 }
  0x12   : > { %p739_p11 = pnand %p480_p9, %p895_p1  ;;  %p533_p12 = scmp.ne.s32.totalorder %s892_s1, %s532_s29 }
  0x13   : > { %p539_p5 = scmp.lt.u32.totalorder %s532_s29, %s892_s1 }
  0x14   : > { %p534_p13 = pneg %p739_p11 }
  0x16   : > { %p535_p0 = pnand %p534_p13, %p533_p12 }
  0x18   : > { %p536_p3 = pneg %p535_p0 }
  0x1a   : > { %p541_p7 = pnand %p539_p5, %p536_p3 }
  0x1c   : > { %544 = shalt.err (!%p541_p7)
}
  0x1d   : > { %s545_s7 = scalar_lea.vmem %s732_s22, 4096  ;;  %p553_p2 = scmp.lt.s32.totalorder %s732_s22, %s732_s22 }
  0x1e   : > { %p546_p9 = scmp.ne.s32.totalorder %s732_s22, %s545_s7  ;;  %p554_p6 = scmp.lt.s32.totalorder %s545_s7, %s545_s7 }
  0x20   : > { %p548_p10 = pnand %p546_p9, %p534_p13  ;;  %p555_p4 = por %p554_p6, %p553_p2 }
  0x22   : > { %p549_p1 = pneg %p548_p10 }
  0x24   : > { %p556_p8 = pnand %p555_p4, %p549_p1 }
  0x26   : > { %559 = shalt.err (!%p556_p8)
}
  0x27   : > { %s663_s8 = smov 256   ;;  %s664_s9 = smov 16  }
  0x28   : > { %483 = dma.hbm_to_vmem [thread:$0]  (!%p739_p11), %s892_s1, 4096, %s732_s22, [#allocation6], %s663_s8, %s663_s8, %s664_s9  }
  0x29   : > { %p25_p2 = scmp.eq.s32.totalorder %s24_s26, 0  ;;  %p34_p1 = scmp.ne.s32.totalorder %s656_s14, %s652_s13 }
  0x2a   : > { %p35_p4 = scmp.eq.s32.totalorder %s660_s15, 0  ;;  %p493_p6 = scmp.lt.s32.totalorder %s660_s15, 2 }
  0x2b   : > { %s775_s17 = scalar_select %p25_p2, %s656_s14, %s27_s25  }
  0x2c   : > { %p36_p8 = por %p35_p4, %p34_p1  ;;  %p902_p10 = scmp.eq.s32.totalorder %s709_s16, 1 }
  0x2d   : > { %s148_s27 = sand.u32 1, %s656_s14   ;;  %s429_s28 = sshll.u32 %s660_s15, 7 }
  0x2e   : > { %p779_p12 = por %p902_p10, %p34_p1  ;;  %s428_s29 = sshll.u32 %s148_s27, 3 }
  0x2f   : > { %s788_s4 = scalar_lea.hbm %s891_s0, %s429_s28  ;;  %s152_s22 = scalar_lea.vmem [#allocation2], %s428_s29 }
  0x30   : > { %s159_s25 = sshll.u32 %s152_s22, 4  ;;  %p790_p11 = pnand %p493_p6, %p36_p8  ;;  %s794_s25 = int_to_ptr.vmem [resolvable:$true] %s159_s25 }
  0x31   : > { %s149_s5 = scalar_lea.sflag [#allocation3], %s148_s27  ;;  %s560_s6 = scalar_lea.hbm %s788_s4, 128 }
  0x32   : > { %p561_p13 = scmp.ne.s32.totalorder %s788_s4, %s560_s6  ;;  %p562_p0 = pneg %p790_p11 }
  0x33   : > { %s565_s9 = scalar_lea.hbm %s891_s0, 256  ;;  %p566_p7 = scmp.lt.u32.totalorder %s788_s4, %s891_s0 }
  0x34   : > { %p563_p3 = pnand %p562_p0, %p561_p13  ;;  %p567_p9 = scmp.lt.u32.totalorder %s565_s9, %s560_s6 }
  0x35   : > { %p569_p1 = scmp.lt.u32.totalorder %s560_s6, %s788_s4 }
  0x36   : > { %p564_p5 = pneg %p563_p3  ;;  %p568_p2 = por %p567_p9, %p566_p7 }
  0x38   : > { %p570_p4 = por %p569_p1, %p568_p2 }
  0x3a   : > { %p571_p6 = pnand %p570_p4, %p564_p5 }
  0x3c   : > { %574 = shalt.err (!%p571_p6)
}
  0x3d   : > { %s575_s27 = scalar_lea.vmem %s794_s25, 128  ;;  %s665_s28 = smov [#allocation2]  }
  0x3e   : > { %p576_p8 = scmp.ne.s32.totalorder %s794_s25, %s575_s27  ;;  %s580_s29 = sshll.u32 %s665_s28, 4  ;;  %s581_s29 = int_to_ptr.vmem [resolvable:$false] %s580_s29 }
  0x3f   : > { %s582_s23 = scalar_lea.vmem %s581_s29, 256  ;;  %p583_p3 = scmp.lt.s32.totalorder %s794_s25, %s581_s29 }
  0x40   : > { %p578_p10 = pnand %p576_p8, %p562_p0  ;;  %p584_p7 = scmp.lt.s32.totalorder %s582_s23, %s575_s27 }
  0x42   : > { %p579_p13 = pneg %p578_p10  ;;  %p585_p9 = por %p584_p7, %p583_p3 }
  0x44   : > { %p586_p2 = pnand %p585_p9, %p579_p13 }
  0x46   : > { %589 = shalt.err (!%p586_p2)
}
  0x47   : > { %487 = dma.hbm_to_vmem [thread:$0]  (!%p790_p11), %s788_s4, 128, %s794_s25, %s149_s5  }
  0x48   : > { %p905_p5 = scmp.ne.s32.totalorder %s900_s20, 0 }
  0x49   : > { %s824_s30 = sand.u32 (!%p905_p5), 1, %s652_s13   ;;  %p906_p0 = scmp.ne.s32.totalorder (!%p905_p5), %s898_s18, 0 }
  0x4a   : > { %168 = sbr.rel (%p905_p5) target bundleno = 359 (0x167), region = 32  ;;  %s431_s22 = sshll.u32 (!%p905_p5), %s824_s30, 3 }
  0x4b   : > { %s171_s6 = scalar_lea.sflag (!%p905_p5), [#allocation3], %s824_s30  ;;  %s828_s7 = scalar_lea.vmem (!%p905_p5), [#allocation2], %s431_s22 }
  0x51   : > { %635 = dma.done.wait (%p906_p0), %s171_s6, 128  }
  0x52   : > { %637 = vsyncadd (%p906_p0), %s171_s6, 4294967168  ;;  %p907_p11 = scmp.eq.s32.totalorder %s709_s16, 0 }
  0x54   : > { %639 = dma.done.wait (%p907_p11), [#allocation6], 4096   ;;  %p908_p1 = pmov %p907_p11 }
  0x55   : > { %v666_v0 = vmov 0.0   ;;  %v203_v1 = vld [vmem:[#allocation5 + $0x8] sm:$0xff]  ;;  %v205_v2 = vld [vmem:[#allocation5 + $0x18] sm:$0xff]  ;;  %v202_v3 = vld [vmem:[#allocation5] sm:$0xff]  ;;  %v236_v50 = vlaneseq  ;;  %s433_s4 = sshll.u32 %s824_s30, 4  ;;  %s439_s25 = sshll.u32 %s709_s16, 8 }
  0x56   : > { %641 = vsyncadd (%p908_p1), [#allocation6], 4294963200  ;;  %310 = vmatprep.mubr.f32.mxu0 %v666_v0  ;;  %v440_v4 = vpack.c.bf16 %v205_v2, %v203_v1  ;;  %v204_v5 = vld [vmem:[#allocation5 + $0x10] sm:$0xff]  ;;  %v207_v6 = vld [vmem:[#allocation5 + $0x28] sm:$0xff]  ;;  %s200_s26 = scalar_lea.vmem [#allocation7], %s433_s4  ;;  %s847_s10 = scalar_lea.hbm %s894_s3, %s439_s25 }
  0x57   : > { %v209_v7 = vld [vmem:[#allocation5 + $0x38] sm:$0xff]  ;;  %v442_v8 = vpack.c.bf16 %v204_v5, %v202_v3  ;;  %v206_v10 = vld [vmem:[#allocation5 + $0x20] sm:$0xff]  ;;  %v208_v11 = vld [vmem:[#allocation5 + $0x30] sm:$0xff]  ;;  %v237_v51 = vshrl.u32 %v236_v50, 7  ;;  %s344_s5 = sshll.u32 %s200_s26, 4  ;;  %s330_s11 = scalar_lea.sflag [#allocation4], %s824_s30  ;;  %s849_s5 = int_to_ptr.vmem [resolvable:$true] %s344_s5 }
  0x58   : > { %v444_v9 = vpack.c.bf16 %v209_v7, %v207_v6  ;;  %v211_v12 = vld [vmem:[#allocation5 + $0x48] sm:$0xff]  ;;  %441 = vmatprep.subr.bf16.mxu0 %v440_v4  ;;  %v213_v13 = vld [vmem:[#allocation5 + $0x58] sm:$0xff]  ;;  %v446_v14 = vpack.c.bf16 %v208_v11, %v206_v10  ;;  %v210_v16 = vld [vmem:[#allocation5 + $0x40] sm:$0xff]  ;;  %s590_s27 = scalar_lea.vmem %s849_s5, 256  ;;  %s667_s16 = smov [#allocation7]  }
  0x59   : > { %443 = vmatpush1.bf16.msra.mxu0 %v442_v8  ;;  %v448_v15 = vpack.c.bf16 %v213_v13, %v211_v12  ;;  %v212_v17 = vld [vmem:[#allocation5 + $0x50] sm:$0xff]  ;;  %v215_v18 = vld [vmem:[#allocation5 + $0x68] sm:$0xff]  ;;  %v217_v19 = vld [vmem:[#allocation5 + $0x78] sm:$0xff]  ;;  %v238_v52 = vsub.s32 0, %v237_v51  ;;  %v242_v54 = vsub.s32 1, %v237_v51  ;;  %p591_p4 = scmp.ne.s32.totalorder %s849_s5, %s590_s27  ;;  %s594_s28 = sshll.u32 %s667_s16, 4  ;;  %s595_s28 = int_to_ptr.vmem [resolvable:$false] %s594_s28 }
  0x5a   : > { %445 = vmatprep.subr.bf16.mxu0 %v444_v9  ;;  %v450_v20 = vpack.c.bf16 %v212_v17, %v210_v16  ;;  %v452_v21 = vpack.c.bf16 %v217_v19, %v215_v18  ;;  %v214_v22 = vld [vmem:[#allocation5 + $0x60] sm:$0xff]  ;;  %v216_v23 = vld [vmem:[#allocation5 + $0x70] sm:$0xff]  ;;  %v219_v24 = vld [vmem:[#allocation5 + $0x88] sm:$0xff]  ;;  %s596_s29 = scalar_lea.vmem %s595_s28, 512  ;;  %p597_p10 = scmp.lt.s32.totalorder %s849_s5, %s595_s28 }
  0x5b   : > { %v221_v25 = vld [vmem:[#allocation5 + $0x98] sm:$0xff]  ;;  %v454_v26 = vpack.c.bf16 %v216_v23, %v214_v22  ;;  %v218_v28 = vld [vmem:[#allocation5 + $0x80] sm:$0xff]  ;;  %v220_v29 = vld [vmem:[#allocation5 + $0x90] sm:$0xff]  ;;  %p592_p6 = pnand %p591_p4, %p779_p12  ;;  %p598_p13 = scmp.lt.s32.totalorder %s596_s29, %s590_s27 }
  0x5c   : > { %v456_v27 = vpack.c.bf16 %v221_v25, %v219_v24  ;;  %v223_v30 = vld [vmem:[#allocation5 + $0xa8] sm:$0xff]  ;;  %v225_v31 = vld [vmem:[#allocation5 + $0xb8] sm:$0xff]  ;;  %v458_v32 = vpack.c.bf16 %v220_v29, %v218_v28  ;;  %v222_v34 = vld [vmem:[#allocation5 + $0xa0] sm:$0xff] }
  0x5d   : > { %447 = vmatpush1.bf16.msra.mxu0 %v446_v14  ;;  %v460_v33 = vpack.c.bf16 %v225_v31, %v223_v30  ;;  %v224_v35 = vld [vmem:[#allocation5 + $0xb0] sm:$0xff]  ;;  %v227_v36 = vld [vmem:[#allocation5 + $0xc8] sm:$0xff]  ;;  %v229_v37 = vld [vmem:[#allocation5 + $0xd8] sm:$0xff]  ;;  %p593_p8 = pneg %p592_p6  ;;  %p599_p3 = por %p598_p13, %p597_p10 }
  0x5e   : > { %449 = vmatprep.subr.bf16.mxu0 %v448_v15  ;;  %v462_v38 = vpack.c.bf16 %v224_v35, %v222_v34  ;;  %v464_v39 = vpack.c.bf16 %v229_v37, %v227_v36  ;;  %v226_v40 = vld [vmem:[#allocation5 + $0xc0] sm:$0xff]  ;;  %v228_v41 = vld [vmem:[#allocation5 + $0xd0] sm:$0xff]  ;;  %v231_v42 = vld [vmem:[#allocation5 + $0xe8] sm:$0xff] }
  0x5f   : > { %v233_v43 = vld [vmem:[#allocation5 + $0xf8] sm:$0xff]  ;;  %v466_v44 = vpack.c.bf16 %v228_v41, %v226_v40  ;;  %v230_v46 = vld [vmem:[#allocation5 + $0xe0] sm:$0xff]  ;;  %v232_v47 = vld [vmem:[#allocation5 + $0xf0] sm:$0xff]  ;;  %p600_p7 = pnand %p599_p3, %p593_p8 }
  0x60   : > { %v468_v45 = vpack.c.bf16 %v233_v43, %v231_v42  ;;  %v470_v48 = vpack.c.bf16 %v232_v47, %v230_v46  ;;  %v201_v49 = vld [vmem:[%s828_s7] sm:$0xff] }
  0x61   : > { %451 = vmatpush1.bf16.msra.mxu0 %v450_v20  ;;  %v234_v53 = vld [vmem:[%s893_s2] sm:$0x3] }
  0x62   : > { %453 = vmatprep.subr.bf16.mxu0 %v452_v21  ;;  %v239_v55 = vrot.slane %v234_v53, %v238_v52  ;;  %v243_v56 = vrot.slane %v234_v53, %v242_v54 }
  0x65   : > { %455 = vmatpush1.bf16.msra.mxu0 %v454_v26 }
  0x66   : > { %457 = vmatprep.subr.bf16.mxu0 %v456_v27 }
  0x69   : > { %459 = vmatpush1.bf16.msra.mxu0 %v458_v32 }
  0x6a   : > { %461 = vmatprep.subr.bf16.mxu0 %v460_v33 }
  0x6d   : > { %463 = vmatpush1.bf16.msra.mxu0 %v462_v38 }
  0x6e   : > { %465 = vmatprep.subr.bf16.mxu0 %v464_v39 }
  0x71   : > { %467 = vmatpush1.bf16.msra.mxu0 %v466_v44 }
  0x72   : > { %469 = vmatprep.subr.bf16.mxu0 %v468_v45 }
  0x75   : > { %471 = vmatpush1.bf16.msra.mxu0 %v470_v48 }
  0x78   : > { %311 = vmatmul.mubr.f32.vlgmr.msra.gmra.mrb[0].mxu0 %v201_v49 }
 0x14b   : > { %v312_v57 = vpop.f32.mrb[0].mxu0 }
 0x14c   : > { %v313_v58 = vadd.f32 %v312_v57, %v239_v55  ;;  %v314_v59 = vpop.f32.mrb[1].mxu0 }
 0x14d   : > { %v315_v60 = vadd.f32 %v314_v59, %v243_v56 }
 0x14e   : > { %v317_v61 = vadd.f32 3.0, %v313_v58 }
 0x14f   : > { %v318_v62 = vadd.f32 3.0, %v315_v60 }
 0x150   : > { %v319_v63 = vmax.f32 %v317_v61, 0.0 }
 0x151   : > { %v320_v0 = vmax.f32 %v318_v62, 0.0 }
 0x152   : > { %v321_v1 = vmin.f32 %v319_v63, 6.0 }
 0x153   : > { %v322_v2 = vmin.f32 %v320_v0, 6.0 }
 0x154   : > { %v323_v3 = vmul.f32 %v321_v1, %v313_v58 }
 0x155   : > { %v324_v4 = vmul.f32 %v322_v2, %v315_v60 }
 0x156   : > { %v325_v5 = vmul.f32 0.16666667, %v323_v3 }
 0x157   : > { %v326_v6 = vmul.f32 0.16666667, %v324_v4 }
 0x158   : > { %327 = vst [vmem:[%s200_s26] sm:$0xff] %v325_v5 }
 0x159   : > { %328 = vst [vmem:[%s200_s26 + $0x8] sm:$0xff] %v326_v6 }
 0x15a   : > { %603 = shalt.err (!%p600_p7)
}
 0x15b   : > { %s604_s23 = scalar_lea.hbm %s847_s10, 256  ;;  %s608_s6 = scalar_lea.hbm %s894_s3, 512 }
 0x15c   : > { %p605_p9 = scmp.ne.s32.totalorder %s847_s10, %s604_s23  ;;  %p609_p0 = scmp.lt.u32.totalorder %s847_s10, %s894_s3 }
 0x15d   : > { %p610_p11 = scmp.lt.u32.totalorder %s608_s6, %s604_s23  ;;  %p612_p4 = scmp.lt.u32.totalorder %s604_s23, %s847_s10 }
 0x15e   : > { %p606_p2 = pnand %p605_p9, %p779_p12 }
 0x15f   : > { %p611_p1 = por %p610_p11, %p609_p0 }
 0x160   : > { %p607_p5 = pneg %p606_p2 }
 0x161   : > { %p613_p6 = por %p612_p4, %p611_p1 }
 0x163   : > { %p614_p8 = pnand %p613_p6, %p607_p5 }
 0x165   : > { %617 = shalt.err (!%p614_p8)
}
 0x166   : > { %478 = dma.vmem_to_hbm [thread:$0]  (%p779_p12), %s849_s5, 256, %s847_s10, %s330_s11  }
 0x167 PF: > { %s356_s20 = sand.u32 1, %s648_s12   ;;  %p909_p10 = scmp.ne.s32.totalorder %s899_s19, 0 }
 0x168   : > { %p910_p13 = scmp.ge.s32.totalorder %s660_s15, 2  ;;  %s357_s4 = scalar_lea.sflag [#allocation4], %s356_s20 }
 0x16a   : > { %p489_p3 = pnand %p910_p13, %p909_p10 }
 0x16c   : > { %643 = dma.done.wait (!%p489_p3), %s357_s4, 256  }
 0x16d   : > { %645 = vsyncadd (!%p489_p3), %s357_s4, 4294967040  ;;  %p17_p7 = scmp.ge.s32.totalorder %s744_s24, 4   ;;  %s911_s12 = smov %s652_s13 }
 0x16e   : > { %s912_s13 = smov %s656_s14  ;;  %s913_s14 = smov %s775_s17 }
 0x16f   : > { %s914_s15 = smov %s744_s24  ;;  %19 = sbr.rel (!%p17_p7) target bundleno = 6 (0x6), region = 81 }
 0x176   :  { %362 = vsyncpa [#allocation3], 1 }
 0x177   :  { %364 = vsyncpa [#allocation3 + $0x1], 1 }
 0x178   :  { %365 = vsyncpa [#allocation6], 1 }
 0x179   :  { %366 = vsyncpa [#allocation4], 1 }
 0x17a   :  { %368 = vsyncpa [#allocation4 + $0x1], 1 }

</bundles_post_ra>
